<compile_context>
chip_gen: v5e
topology: v5e:2x2
jax: 0.10.0
libtpu: 0.0.40
codegen_flags: <defaults>
</compile_context>

<pallas_src>
import functools

import jax
import jax.numpy as jnp
import numpy as np
from jax import lax
from jax.experimental import pallas as pl
from jax.experimental.pallas import tpu as pltpu


def _head_kernel(x_ref, wkvq_ref, slab_ref, *, scale, decoder):
    x = x_ref[...]                                           # (B, T, C) fp32
    B, T, C = x.shape
    hs = wkvq_ref.shape[1] // 3

    # Fused K/V/Q projection: one MXU push instead of three.
    kvq = jnp.dot(x.reshape(B * T, C), wkvq_ref[...],
                  preferred_element_type=jnp.float32)        # (B*T, 3*hs)
    kvq = kvq.reshape(B, T, 3 * hs)                          # columns: [k | v | q]

    # Retire the projections immediately (no end-of-kernel concatenate, and
    # kvq does not stay live in vregs through the attention computation).
    slab_ref[:, :, 0:3 * hs] = kvq.astype(slab_ref.dtype)

    k = kvq[..., 0 * hs:1 * hs]
    v = kvq[..., 1 * hs:2 * hs]
    q = kvq[..., 2 * hs:3 * hs]

    # Scores (B, Tq, Tk); scale folded into q (T*hs mul instead of T*T).
    wei = jnp.einsum('btd,bsd->bts', q * scale, k,
                     preferred_element_type=jnp.float32)

    if decoder:
        # Single (T, T) additive mask instead of two (B, T, T) int32 iotas
        # + compare + select per element.
        qi = lax.broadcasted_iota(jnp.int32, (T, T), 0)      # query index
        ki = lax.broadcasted_iota(jnp.int32, (T, T), 1)      # key index
        mask = jnp.where(qi >= ki, 0.0, -1e30).astype(jnp.float32)
        wei = wei + mask[None, :, :]

    # Reference does F.softmax(wei, dim=1) -> normalize over the QUERY axis.
    m = jnp.max(wei, axis=1, keepdims=True)
    e = jnp.exp(wei - m)
    s = jnp.sum(e, axis=1, keepdims=True)
    # Exact reciprocal keeps tight parity with the reference; for large T,
    # pl.reciprocal(s, approx=True) moves this to the (free) EUP slot.
    p = e * pl.reciprocal(s, approx=False)

    out = jnp.einsum('bts,bsd->btd', p, v,
                     preferred_element_type=jnp.float32)     # (B, T, hs)
    slab_ref[:, :, 3 * hs:4 * hs] = out.astype(slab_ref.dtype)


def _num_tensorcores_per_chip():
    """Best-effort TC-per-chip detection; default to 1 (grid-free kernel)."""
    try:
        d = jax.devices()[0]
        kind = (getattr(d, "device_kind", "") or "").lower()
        if "v7" in kind:
            return 2
        return int(getattr(d, "num_cores", 1)) or 1
    except Exception:
        return 1


_NUM_TC = _num_tensorcores_per_chip()


def fuse_head_weights(wk, wq, wv):
    """Fuse the three (C, head_size) projections once, ordered [k | v | q]."""
    return jnp.concatenate([wk, wv, wq], axis=1)             # (C, 3*hs)


def _pallas_head(x, wkvq, *, decoder):
    B, T, C = x.shape
    hs = wkvq.shape[1] // 3
    scale = C ** (-0.5)
    kernel = functools.partial(_head_kernel, scale=scale, decoder=decoder)
    out_shape = jax.ShapeDtypeStruct((B, T, 4 * hs), x.dtype)

    cost = pl.CostEstimate(
        flops=2 * B * T * C * 3 * hs + 4 * B * T * T * hs,
        transcendentals=B * T * T,
        bytes_accessed=4 * (B * T * C + C * 3 * hs + B * T * 4 * hs),
    )

    if _NUM_TC >= 2 and B > 1:
        # One batch element per grid step; "parallel" lets a 2-TC chip (v7x)
        # shard the batch across its TensorCores.
        return pl.pallas_call(
            kernel,
            out_shape=out_shape,
            grid=(B,),
            in_specs=[pl.BlockSpec((1, T, C), lambda b: (b, 0, 0)),
                      pl.BlockSpec((C, 3 * hs), lambda b: (0, 0))],
            out_specs=pl.BlockSpec((1, T, 4 * hs), lambda b: (b, 0, 0)),
            compiler_params=pltpu.CompilerParams(
                dimension_semantics=("parallel",)),
            cost_estimate=cost,
        )(x, wkvq)

    # Single-TC chips (v5e / v6e): grid-free, whole problem in one step.
    return pl.pallas_call(
        kernel,
        out_shape=out_shape,
        in_specs=[pl.BlockSpec(memory_space=pltpu.MemorySpace.VMEM),
                  pl.BlockSpec(memory_space=pltpu.MemorySpace.VMEM)],
        out_specs=pl.BlockSpec(memory_space=pltpu.MemorySpace.VMEM),
        cost_estimate=cost,
    )(x, wkvq)


@functools.partial(jax.jit, static_argnames=("decoder",))
def head_attention(x, wkvq, *, decoder=True):
    """x: (B, T, C); wkvq: pre-fused (C, 3*head_size) weight, columns [k|v|q].

    Returns (out, k, v, q), each (B, T, head_size), matching Head.forward.
    """
    hs = wkvq.shape[1] // 3
    slab = _pallas_head(x, wkvq, decoder=decoder)            # [k | v | q | out]
    k = slab[..., 0 * hs:1 * hs]
    v = slab[..., 1 * hs:2 * hs]
    q = slab[..., 2 * hs:3 * hs]
    out = slab[..., 3 * hs:4 * hs]
    return out, k, v, q


def _reference(x, wk, wq, wv, *, decoder=True):
    """Pure-JAX mirror of the PyTorch Head.forward (eval mode)."""
    B, T, C = x.shape
    k = x @ wk
    q = x @ wq
    v = x @ wv
    wei = (q @ jnp.swapaxes(k, -2, -1)) * C ** (-0.5)
    if decoder:
        tril = jnp.tril(jnp.ones((T, T), x.dtype))
        wei = jnp.where(tril == 0, -jnp.inf, wei)
    wei = jax.nn.softmax(wei, axis=1)                        # dim=1, as in reference
    out = wei @ v
    return out, k, v, q


if __name__ == "__main__":
    B, T, n_embed, head_size = 2, 8, 32, 32

    key = jax.random.PRNGKey(0)
    kx, kkey, kqry, kval = jax.random.split(key, 4)
    x = jax.random.normal(kx, (B, T, n_embed), dtype=jnp.float32)
    # nn.Linear(n_embed, head_size, bias=False) weights, stored (in, out).
    wk = jax.random.normal(kkey, (n_embed, head_size), dtype=jnp.float32) * 0.1
    wq = jax.random.normal(kqry, (n_embed, head_size), dtype=jnp.float32) * 0.1
    wv = jax.random.normal(kval, (n_embed, head_size), dtype=jnp.float32) * 0.1

    # Fuse the projection weights ONCE (hoisted out of the per-call path).
    wkvq = fuse_head_weights(wk, wq, wv)
    jax.block_until_ready(wkvq)

    out, k, v, q = head_attention(x, wkvq, decoder=True)
    jax.block_until_ready((out, k, v, q))

    with jax.default_matmul_precision("highest"):
        ref_out, ref_k, ref_v, ref_q = _reference(x, wk, wq, wv, decoder=True)

    np.testing.assert_allclose(out, ref_out, rtol=1e-5, atol=1e-5)
    np.testing.assert_allclose(k, ref_k, rtol=1e-5, atol=1e-5)
    np.testing.assert_allclose(v, ref_v, rtol=1e-5, atol=1e-5)
    np.testing.assert_allclose(q, ref_q, rtol=1e-5, atol=1e-5)

    print("KERNEL_OK")
</pallas_src>

<mosaic_0001>
module attributes {stable_mosaic.version = 11 : i64} {
  func.func @_head_kernel(%arg0: memref<2x8x32xf32, #tpu.memory_space<vmem>>, %arg1: memref<32x96xf32, #tpu.memory_space<vmem>>, %arg2: memref<2x8x128xf32, #tpu.memory_space<vmem>>) attributes {dimension_semantics = [], scalar_prefetch = 0 : i64, scratch_operands = 0 : i64, tpu.core_type = #tpu.core_type<tc>} {
    %c0 = arith.constant 0 : index
    %c0_0 = arith.constant 0 : index
    %c0_1 = arith.constant 0 : index
    %0 = vector.load %arg0[%c0, %c0_0, %c0_1] : memref<2x8x32xf32, #tpu.memory_space<vmem>>, vector<2x8x32xf32>
    %1 = vector.shape_cast %0 : vector<2x8x32xf32> to vector<16x32xf32>
    %c0_2 = arith.constant 0 : index
    %c0_3 = arith.constant 0 : index
    %2 = vector.load %arg1[%c0_2, %c0_3] : memref<32x96xf32, #tpu.memory_space<vmem>>, vector<32x96xf32>
    %cst = arith.constant dense<0.000000e+00> : vector<16x96xf32>
    %3 = tpu.matmul %1, %2, %cst {dimension_numbers = #tpu.dot_dimension_numbers<[1], [0], [0], [1], [0, 0, 1, 1], [], []>} : vector<16x32xf32>, vector<32x96xf32>, vector<16x96xf32> -> vector<16x96xf32>
    %4 = vector.shape_cast %3 : vector<16x96xf32> to vector<2x8x96xf32>
    %c0_4 = arith.constant 0 : index
    %c0_5 = arith.constant 0 : index
    %c0_6 = arith.constant 0 : index
    %5 = vector.load %arg2[%c0_4, %c0_5, %c0_6] : memref<2x8x128xf32, #tpu.memory_space<vmem>>, vector<2x8x96xf32>
    tpu.vector_store %arg2[%c0_4, %c0_5, %c0_6], %4 {strides = array<i32>} : memref<2x8x128xf32, #tpu.memory_space<vmem>>, vector<2x8x96xf32>,
    %6 = vector.extract_strided_slice %4 {offsets = [0, 0, 0], sizes = [2, 8, 32], strides = [1, 1, 1]} : vector<2x8x96xf32> to vector<2x8x32xf32>
    %7 = vector.extract_strided_slice %4 {offsets = [0, 0, 32], sizes = [2, 8, 32], strides = [1, 1, 1]} : vector<2x8x96xf32> to vector<2x8x32xf32>
    %8 = vector.extract_strided_slice %4 {offsets = [0, 0, 64], sizes = [2, 8, 32], strides = [1, 1, 1]} : vector<2x8x96xf32> to vector<2x8x32xf32>
    %cst_7 = arith.constant 0.176776692 : f32
    %9 = vector.broadcast %cst_7 : f32 to vector<2x8x32xf32>
    %10 = arith.mulf %8, %9 : vector<2x8x32xf32>
    "tpu.trace_start"() <{level = 10 : i32, message = "btd,bsd->bts"}> : () -> ()
    %cst_8 = arith.constant dense<0.000000e+00> : vector<2x8x8xf32>
    %11 = tpu.matmul %10, %6, %cst_8 {dimension_numbers = #tpu.dot_dimension_numbers<[2], [2], [1], [1], [0, 0, 0, 1, 1, 1], [0], [0]>} : vector<2x8x32xf32>, vector<2x8x32xf32>, vector<2x8x8xf32> -> vector<2x8x8xf32>
    "tpu.trace_stop"() : () -> ()
    %12 = tpu.iota {dimensions = array<i32: 0>} : vector<8x8xi32>
    %13 = tpu.iota {dimensions = array<i32: 1>} : vector<8x8xi32>
    %14 = arith.cmpi sge, %12, %13 : vector<8x8xi32>
    %cst_9 = arith.constant 0.000000e+00 : f32
    %cst_10 = arith.constant -1.000000e+30 : f32
    %15 = vector.broadcast %cst_9 : f32 to vector<8x8xf32>
    %16 = vector.broadcast %cst_10 : f32 to vector<8x8xf32>
    %17 = arith.select %14, %15, %16 : vector<8x8xi1>, vector<8x8xf32>
    %18 = vector.shape_cast %17 : vector<8x8xf32> to vector<1x8x8xf32>
    %19 = vector.broadcast %18 : vector<1x8x8xf32> to vector<2x8x8xf32>
    %20 = arith.addf %11, %19 : vector<2x8x8xf32>
    %cst_11 = arith.constant dense<0xFF800000> : vector<2x8xf32>
    %21 = vector.multi_reduction <maximumf>, %20, %cst_11 [1] : vector<2x8x8xf32> to vector<2x8xf32>
    %22 = vector.shape_cast %21 : vector<2x8xf32> to vector<2x1x8xf32>
    %23 = vector.broadcast %22 : vector<2x1x8xf32> to vector<2x8x8xf32>
    %24 = arith.subf %20, %23 : vector<2x8x8xf32>
    %25 = math.exp %24 : vector<2x8x8xf32>
    %cst_12 = arith.constant dense<0.000000e+00> : vector<2x8xf32>
    %26 = vector.multi_reduction <add>, %25, %cst_12 [1] : vector<2x8x8xf32> to vector<2x8xf32>
    %27 = vector.shape_cast %26 : vector<2x8xf32> to vector<2x1x8xf32>
    %28 = tpu.reciprocal %27 : vector<2x1x8xf32> -> vector<2x1x8xf32>
    %29 = vector.broadcast %28 : vector<2x1x8xf32> to vector<2x8x8xf32>
    %30 = arith.mulf %25, %29 : vector<2x8x8xf32>
    "tpu.trace_start"() <{level = 10 : i32, message = "bts,bsd->btd"}> : () -> ()
    %cst_13 = arith.constant dense<0.000000e+00> : vector<2x8x32xf32>
    %31 = tpu.matmul %30, %7, %cst_13 {dimension_numbers = #tpu.dot_dimension_numbers<[2], [1], [1], [2], [0, 0, 0, 1, 1, 2], [0], [0]>} : vector<2x8x8xf32>, vector<2x8x32xf32>, vector<2x8x32xf32> -> vector<2x8x32xf32>
    "tpu.trace_stop"() : () -> ()
    %c0_14 = arith.constant 0 : index
    %c0_15 = arith.constant 0 : index
    %c96 = arith.constant 96 : index
    %32 = vector.load %arg2[%c0_14, %c0_15, %c96] : memref<2x8x128xf32, #tpu.memory_space<vmem>>, vector<2x8x32xf32>
    tpu.vector_store %arg2[%c0_14, %c0_15, %c96], %31 {strides = array<i32>} : memref<2x8x128xf32, #tpu.memory_space<vmem>>, vector<2x8x32xf32>,
    return
  }
}

</mosaic_0001>

<bundles_post_ra>
// kernel: head_attention.1
= control target key start
LH: loop header
LB: loop body
LE: loop exit
PB: predicated region body
PF: predicated region fallthrough
CT: control target
= control target key end

     0   :  { %7 = vsyncpa [#allocation3], 0  ;;  %s411_s0 = inlined_call_operand.hbm [shape: f32[2,8,32], index: 0, kind: input, shape index: {}]   ;;  %s412_s1 = inlined_call_operand.hbm [shape: f32[32,96], index: 1, kind: input, shape index: {}]   ;;  %s413_s2 = inlined_call_operand.vmem [shape: f32[2,8,128], index: 2, kind: output, shape index: {}]  }
   0x1   :  { %s13_s11 = sshll.u32 %s411_s0, 4  ;;  %s14_s11 = int_to_ptr.hbm [resolvable:$true] %s13_s11 }
   0x2   :  { %8 = vsyncpa [#allocation5], 0  ;;  %s355_s12 = smov [#allocation2]   ;;  %s26_s16 = sshll.u32 %s412_s1, 4  ;;  %s27_s16 = int_to_ptr.hbm [resolvable:$true] %s26_s16 }
   0x3   :  { %s15_s13 = sshll.u32 %s355_s12, 4  ;;  %s356_s17 = smov 128   ;;  %s16_s13 = int_to_ptr.vmem [resolvable:$true] %s15_s13 }
   0x4   :  { %s357_s18 = smov 8   ;;  %s358_s19 = smov [#allocation4]  }
   0x5   :  { %21 = dma.hbm_to_vmem [thread:$0]  %s14_s11, 256, %s16_s13, [#allocation3], %s356_s17, %s356_s17, %s357_s18  }
   0x6   :  { %s28_s20 = sshll.u32 %s358_s19, 4  ;;  %s29_s20 = int_to_ptr.vmem [resolvable:$true] %s28_s20 }
   0x7   :  { %34 = dma.hbm_to_vmem [thread:$0]  %s27_s16, 512, %s29_s20, [#allocation5], %s356_s17, %s356_s17, %s357_s18  }
   0x8   :  { %351 = dma.done.wait [#allocation3], 256  }
   0x9   :  { %352 = vsyncadd [#allocation3], 4294967040 }
   0xa   :  { %353 = dma.done.wait [#allocation5], 512  }
   0xb   :  { %354 = vsyncadd [#allocation5], 4294966784  ;;  %v48_v0 = vld [vmem:[#allocation4 + $0x18] sm:$0xff]  ;;  %v47_v1 = vld [vmem:[#allocation4 + $0x10] sm:$0xff]  ;;  %vm49_vm0 = vcmask 261120   ;;  %vm79_vm1 = vcmask 785408   ;;  %v84_v14 = vlaneseq }
   0xc   :  { %68 = vmatpush.msra.mxu0 %v48_v0  ;;  %v46_v2 = vld [vmem:[#allocation4 + $0x8] sm:$0xff]  ;;  %v45_v3 = vld [vmem:[#allocation4] sm:$0xff]  ;;  %v43_v4 = vld [vmem:[#allocation2] sm:$0xff]  ;;  %s359_s21 = smov 96   ;;  %s360_s22 = smov 64   ;;  %vm146_vm3 = vcmask 64512  }
   0xd   :  { %v44_v5 = vld [vmem:[#allocation2 + $0x8] sm:$0xff]  ;;  %v85_v15 = vshrl.u32 %v84_v14, 7  ;;  %v87_v16 = vand.u32 127, %v84_v14  ;;  %v361_v17 = vmov -1e+30   ;;  %vm271_vm12 = vcmask 1048320  }
   0xe   :  { %69 = vmatpush.msra.mxu0 %v47_v1 }
   0xf   :  { %vm88_vm2 = vcmp.ge.s32.totalorder %v85_v15, %v87_v16 }
  0x10   :  { %70 = vmatpush.msra.mxu0 %v46_v2  ;;  %v89_v18 = vsel %vm88_vm2, 0.0, %v361_v17 }
  0x12   :  { %71 = vmatpush.msra.mxu0 %v45_v3 }
  0x13   :  { %280 = vmatmul.msk.f32.vlgmr.msra.gmra.mxu0 %vm49_vm0, %v43_v4 }
  0x1b   :  { %281 = vmatmul.msk.f32.gmra.mxu0 %vm49_vm0, %v44_v5 }
  0x90   :  { %v73_v6 = vpop.f32.mrf.mxu0 }
  0x91   :  { %80 = vst.msk [vmem:[%s413_s2] sm:$0xff] %vm79_vm1, %v73_v6  ;;  %211 = vrot.lane.b32.xlu1 %v73_v6, %s359_s21  ;;  %282 = vmatpush.xpose.msk.msra.mxu1 %vm49_vm0, %v73_v6  ;;  %v82_v7 = vmul.f32 0.17677669, %v73_v6 }
  0x93   :  { %91 = vrot.lane.b32.xlu0 %v82_v7, %s360_s22 }
  0x98   :  { %v76_v8 = vpop.f32.mrf.mxu0 }
  0x99   :  { %81 = vst.msk [vmem:[%s413_s2 + $0x8] sm:$0xff] %vm79_vm1, %v76_v8  ;;  %v83_v9 = vmul.f32 0.17677669, %v76_v8  ;;  %237 = vrot.lane.b32.xlu1 %v76_v8, %s359_s21  ;;  %284 = vmatpush.xpose.msk.msra.mxu2 %vm49_vm0, %v76_v8 }
  0x9b   :  { %119 = vrot.lane.b32.xlu0 %v83_v9, %s360_s22 }
 0x103   :  { %v212_v10 = vpop.permute.xlu1 %211 }
 0x104   :  { %232 = vmatpush.msra.mxu3 %v212_v10 }
 0x105   :  { %v92_v11 = vpop.permute.xlu0 %91 }
 0x106   :  { %283 = vmatmul.msk.f32.vlgmr.msra.gmra.mxu1 %vm49_vm0, %v92_v11 }
 0x10b   :  { %v238_v12 = vpop.permute.xlu1 %237 }
 0x10c   :  { %258 = vmatpush.msrb.mxu3 %v238_v12 }
 0x10d   :  { %v120_v13 = vpop.permute.xlu0 %119 }
 0x10e   :  { %285 = vmatmul.msk.f32.vlgmr.msra.gmra.mxu2 %vm49_vm0, %v120_v13 }
 0x183   :  { %v115_v19 = vpop.f32.mrf.mxu1 }
 0x184   :  { %v116_v20 = vadd.f32 %v115_v19, %v89_v18 }
 0x186   :  { %v147_v21 = vsel %vm146_vm3, %v116_v20, -inf }
 0x187   :  { %v148_v22 = vrot.slane %v147_v21, 4 }
 0x189   :  { %v149_v23 = vmax.f32 %v147_v21, %v148_v22 }
 0x18b   :  { %v150_v24 = vrot.slane %v149_v23, 2 }
 0x18d   :  { %v151_v25 = vmax.f32 %v149_v23, %v150_v24 }
 0x18f   :  { %v152_v26 = vrot.slane %v151_v25, 1 }
 0x191   :  { %v153_v27 = vmax.f32 %v151_v25, %v152_v26  ;;  %v143_v28 = vpop.f32.mrf.mxu2 }
 0x192   :  { %v144_v29 = vadd.f32 %v143_v28, %v89_v18 }
 0x193   :  { %v161_v30 = vsub.f32 %v116_v20, %v153_v27 }
 0x194   :  { %v154_v31 = vsel %vm146_vm3, %v144_v29, -inf }
 0x195   :  { %v163_v32 = vmul.f32 1.442695, %v161_v30  ;;  %v155_v33 = vrot.slane %v154_v31, 4 }
 0x197   :  { %295 = vpow2.f32 %v163_v32  ;;  %v156_v34 = vmax.f32 %v154_v31, %v155_v33 }
 0x199   :  { %v157_v35 = vrot.slane %v156_v34, 2 }
 0x19b   :  { %v158_v36 = vmax.f32 %v156_v34, %v157_v35 }
 0x19d   :  { %v296_v37 = vpop.eup %295  ;;  %v159_v38 = vrot.slane %v158_v36, 1 }
 0x19e   :  { %v167_v39 = vsel %vm146_vm3, %v296_v37, 0.0 }
 0x19f   :  { %v168_v40 = vrot.slane %v167_v39, 4  ;;  %v160_v41 = vmax.f32 %v158_v36, %v159_v38 }
 0x1a1   :  { %v169_v42 = vadd.f32 %v168_v40, %v167_v39  ;;  %v162_v43 = vsub.f32 %v144_v29, %v160_v41 }
 0x1a3   :  { %v170_v44 = vrot.slane %v169_v42, 2  ;;  %v165_v45 = vmul.f32 1.442695, %v162_v43 }
 0x1a5   :  { %v171_v46 = vadd.f32 %v170_v44, %v169_v42  ;;  %297 = vpow2.f32 %v165_v45 }
 0x1a7   :  { %v172_v47 = vrot.slane %v171_v46, 1 }
 0x1a9   :  { %v173_v48 = vadd.f32 %v172_v47, %v171_v46 }
 0x1ab   :  { %v298_v49 = vpop.eup %297  ;;  %299 = vrcp.f32 %v173_v48  ;;  %v192_v59 = vand.u32 2147483648, %v173_v48  ;;  %v190_v61 = vand.u32 2147483647, %v173_v48  ;;  %vm186_vm5 = vweird.f32 %v173_v48 }
 0x1ac   :  { %v174_v50 = vsel %vm146_vm3, %v298_v49, 0.0 }
 0x1ad   :  { %v175_v51 = vrot.slane %v174_v50, 4  ;;  %v193_v0 = vor.u32 1.1754944e-38, %v192_v59  ;;  %vm191_vm7 = vcmp.eq.f32.partialorder %v190_v61, 8.507059e+37 }
 0x1af   :  { %v176_v52 = vadd.f32 %v175_v51, %v174_v50 }
 0x1b1   :  { %v300_v53 = vpop.eup %299  ;;  %v177_v54 = vrot.slane %v176_v52, 2 }
 0x1b2   :  { %v182_v55 = vmul.f32 %v300_v53, %v173_v48  ;;  %vm187_vm4 = vweird.f32 %v300_v53 }
 0x1b3   :  { %v178_v56 = vadd.f32 %v177_v54, %v176_v52  ;;  %vm188_vm6 = vmor %vm186_vm5, %vm187_vm4 }
 0x1b4   :  { %v183_v57 = vsub.f32 1.0, %v182_v55 }
 0x1b5   :  { %v179_v58 = vrot.slane %v178_v56, 1 }
 0x1b6   :  { %v184_v60 = vmul.f32 %v300_v53, %v183_v57 }
 0x1b7   :  { %v180_v62 = vadd.f32 %v179_v58, %v178_v56 }
 0x1b8   :  { %v185_v63 = vadd.f32 %v300_v53, %v184_v60 }
 0x1b9   :  { %301 = vrcp.f32 %v180_v62  ;;  %v206_v7 = vand.u32 2147483648, %v180_v62  ;;  %v204_v9 = vand.u32 2147483647, %v180_v62  ;;  %vm200_vm9 = vweird.f32 %v180_v62 }
 0x1ba   :  { %v189_v1 = vsel %vm188_vm6, %v300_v53, %v185_v63 }
 0x1bb   :  { %v194_v2 = vsel %vm191_vm7, %v193_v0, %v189_v1  ;;  %v207_v11 = vor.u32 1.1754944e-38, %v206_v7  ;;  %vm205_vm11 = vcmp.eq.f32.partialorder %v204_v9, 8.507059e+37 }
 0x1bc   :  { %v209_v3 = vmul.f32 %v296_v37, %v194_v2 }
 0x1be   :  { %286 = vmatmul.msk.f32.vlgmr.msra.gmra.mxu3 %vm146_vm3, %v209_v3 }
 0x1bf   :  { %v302_v4 = vpop.eup %301 }
 0x1c0   :  { %v196_v5 = vmul.f32 %v302_v4, %v180_v62  ;;  %vm201_vm8 = vweird.f32 %v302_v4 }
 0x1c1   :  { %vm202_vm10 = vmor %vm200_vm9, %vm201_vm8 }
 0x1c2   :  { %v197_v6 = vsub.f32 1.0, %v196_v5 }
 0x1c4   :  { %v198_v8 = vmul.f32 %v302_v4, %v197_v6 }
 0x1c6   :  { %v199_v10 = vadd.f32 %v302_v4, %v198_v8 }
 0x1c8   :  { %v203_v12 = vsel %vm202_vm10, %v302_v4, %v199_v10 }
 0x1c9   :  { %v208_v13 = vsel %vm205_vm11, %v207_v11, %v203_v12 }
 0x1ca   :  { %v210_v14 = vmul.f32 %v298_v49, %v208_v13 }
 0x1cc   :  { %287 = vmatmul.msk.f32.vlgmr.msrb.gmra.mxu3 %vm146_vm3, %v210_v14 }
 0x241   :  { %v234_v15 = vpop.f32.mrf.mxu3 }
 0x242   :  { %265 = vrot.lane.b32.xlu2 %v234_v15, %s359_s21 }
 0x24f   :  { %v260_v16 = vpop.f32.mrf.mxu3 }
 0x250   :  { %267 = vrot.lane.b32.xlu2 %v260_v16, %s359_s21 }
 0x29c   :  { %v266_v17 = vpop.permute.xlu2 %265 }
 0x29d   :  { %272 = vst.msk [vmem:[%s413_s2] sm:$0xff] %vm271_vm12, %v266_v17 }
 0x2aa   :  { %v268_v18 = vpop.permute.xlu2 %267 }
 0x2ab   :  { %273 = vst.msk [vmem:[%s413_s2 + $0x8] sm:$0xff] %vm271_vm12, %v268_v18 }
 0x2ac   :  { %278 = vsyncpa [#allocation3], 1 }
 0x2ad   :  { %279 = vsyncpa [#allocation5], 1 }

</bundles_post_ra>
